<compile_context>
chip_gen: v6e
topology: v6e:2x2x1
jax: 0.10.0
libtpu: 0.0.40
codegen_flags: <defaults>
</compile_context>

<pallas_src>
import jax
import jax.numpy as jnp
from jax.experimental import pallas as pl
from jax.experimental.pallas import tpu as pltpu

LANES = 128
SUBLANES = 8
ROW_TILE = 2048      # rows per grid step: (2048, 128) f32 tile = 1 MiB
MAX_CHUNKS = 2       # leading "parallel" grid axis (v7x has 2 TensorCores)


def _pallas_sq_err_partials(s2d, t2d):
    """Sum of (s - t)^2 over a (rows, 128) slab, returned as per-chunk
    (num_chunks, 8, 128) f32 partial sums (caller finishes with jnp.sum)."""
    rows = s2d.shape[0]                        # multiple of 8
    row_tile = min(ROW_TILE, rows)             # multiple of 8, <= rows
    num_blocks = pl.cdiv(rows, row_tile)
    num_chunks = min(MAX_CHUNKS, num_blocks)
    inner = pl.cdiv(num_blocks, num_chunks)

    # Mask is only required when the logical (chunks x steps) block grid
    # overruns the actual row count (ragged edge block and/or clamped blocks).
    needs_mask = (num_chunks * inner * row_tile) != rows

    def kernel(s_ref, t_ref, o_ref):
        i = pl.program_id(1)

        @pl.when(i == 0)
        def _():
            o_ref[...] = jnp.zeros_like(o_ref)

        d = s_ref[...].astype(jnp.float32) - t_ref[...].astype(jnp.float32)
        sq = d * d
        if needs_mask:
            # Use the *unclamped* logical block index so clamped (fully
            # out-of-range) blocks and the ragged edge block contribute 0.
            blk = pl.program_id(0) * inner + i
            row_idx = blk * row_tile + jax.lax.broadcasted_iota(
                jnp.int32, (row_tile, LANES), 0)
            sq = jnp.where(row_idx < rows, sq, 0.0)

        # Fold (row_tile, 128) -> (8, 128): elementwise adds of (8,128) row
        # groups (pure VPU work, no cross-lane reduce, no masked stores).
        o_ref[...] += jnp.sum(
            sq.reshape(row_tile // SUBLANES, SUBLANES, LANES), axis=0)

    def in_map(c, i):
        # Clamp fully out-of-range logical blocks onto the last valid block;
        # their contribution is zeroed by the row mask in the kernel.
        return (jnp.minimum(c * inner + i, num_blocks - 1), 0)

    bytes_accessed = 2 * rows * LANES * s2d.dtype.itemsize

    return pl.pallas_call(
        kernel,
        out_shape=jax.ShapeDtypeStruct((num_chunks, SUBLANES, LANES), jnp.float32),
        grid_spec=pltpu.PrefetchScalarGridSpec(
            num_scalar_prefetch=0,
            grid=(num_chunks, inner),
            in_specs=[
                pl.BlockSpec((row_tile, LANES), in_map),
                pl.BlockSpec((row_tile, LANES), in_map),
            ],
            out_specs=pl.BlockSpec((None, SUBLANES, LANES),
                                   lambda c, i: (c, 0, 0)),
        ),
        compiler_params=pltpu.CompilerParams(
            dimension_semantics=("parallel", "arbitrary")),
        cost_estimate=pl.CostEstimate(
            flops=3 * rows * LANES,
            transcendentals=0,
            bytes_accessed=bytes_accessed),
    )(s2d, t2d)


def my_mse_loss(s_input, t_input, weight=None, avg_factor=None,
                reduction="mean", loss_weight=1.0):
    """JAX/Pallas equivalent of MyMSELoss.forward."""
    assert s_input.shape == t_input.shape
    assert reduction in ("none", "mean", "sum")
    n = s_input.size  # static Python int

    if weight is not None or reduction == "none":
        # TODO(synk): elementwise-weight / 'none' paths have no reduction hot
        # loop; kept in plain JAX (native dtype preserved).
        diff = s_input - t_input
        loss = diff * diff
        if weight is not None:
            loss = loss * weight
        if reduction == "none":
            return loss_weight * loss
        if reduction == "sum":
            return loss_weight * jnp.sum(loss)
        denom = jnp.float32(avg_factor) if avg_factor is not None else jnp.float32(n)
        return loss_weight * (jnp.sum(loss.astype(jnp.float32)) / denom)

    # --- Pallas hot path: weight is None, reduction in {'mean', 'sum'} ---
    s_flat = s_input.reshape(-1)   # native dtype, no astype copy
    t_flat = t_input.reshape(-1)
    pad_unit = SUBLANES * LANES
    padded = ((n + pad_unit - 1) // pad_unit) * pad_unit
    if padded != n:
        # TODO(synk): only hit for ragged n; zero padding contributes 0 to the
        # squared-error sum (in-kernel mask handles everything past `rows`).
        s_flat = jnp.pad(s_flat, (0, padded - n))
        t_flat = jnp.pad(t_flat, (0, padded - n))
    rows = padded // LANES
    s2d = s_flat.reshape(rows, LANES)
    t2d = t_flat.reshape(rows, LANES)

    sq_sum = jnp.sum(_pallas_sq_err_partials(s2d, t2d))

    if reduction == "sum":
        loss = sq_sum
    else:  # 'mean'
        denom = jnp.float32(avg_factor) if avg_factor is not None else jnp.float32(n)
        loss = sq_sum / denom
    return jnp.float32(loss_weight) * loss


if __name__ == "__main__":
    key = jax.random.PRNGKey(0)
    k1, k2, k3, k4 = jax.random.split(key, 4)

    # Small NCHW inputs matching the module's typical use (feature-map MSE).
    s_input = jax.random.normal(k1, (2, 4, 16, 16), dtype=jnp.float32)
    t_input = jax.random.normal(k2, (2, 4, 16, 16), dtype=jnp.float32)

    loss = my_mse_loss(s_input, t_input, reduction="mean", loss_weight=1.0)
    loss = jax.block_until_ready(loss)
    ref = jnp.mean(jnp.square(s_input - t_input))
    assert jnp.allclose(loss, ref, rtol=1e-5, atol=1e-6), (loss, ref)

    # bf16 inputs go through the kernel in native dtype (upcast in-vreg).
    s_bf = s_input.astype(jnp.bfloat16)
    t_bf = t_input.astype(jnp.bfloat16)
    loss_bf = jax.block_until_ready(my_mse_loss(s_bf, t_bf))
    ref_bf = jnp.mean(jnp.square(s_bf.astype(jnp.float32) - t_bf.astype(jnp.float32)))
    assert jnp.allclose(loss_bf, ref_bf, rtol=1e-3, atol=1e-3), (loss_bf, ref_bf)

    # Larger check exercising the multi-block grid, the ragged edge-block
    # mask and the clamped (fully out-of-range) block path:
    # rows = 5000 -> 3 logical blocks over a (2 chunks x 2 steps) grid.
    s_big = jax.random.normal(k3, (10, 1, 250, 256), dtype=jnp.float32)
    t_big = jax.random.normal(k4, (10, 1, 250, 256), dtype=jnp.float32)
    loss_sum = jax.block_until_ready(
        my_mse_loss(s_big, t_big, reduction="sum", loss_weight=0.5))
    ref_sum = 0.5 * jnp.sum(jnp.square(s_big - t_big))
    assert jnp.allclose(loss_sum, ref_sum, rtol=1e-4, atol=1e-2), (loss_sum, ref_sum)

    print("KERNEL_OK")
</pallas_src>

<mosaic_0001>
module attributes {stable_mosaic.version = 11 : i64} {
  func.func @kernel(%arg0: i32, %arg1: i32, %arg2: memref<16x128xf32, #tpu.memory_space<vmem>>, %arg3: memref<16x128xf32, #tpu.memory_space<vmem>>, %arg4: memref<1x8x128xf32, #tpu.memory_space<vmem>>) attributes {dimension_semantics = [#tpu.dimension_semantics<parallel>, #tpu.dimension_semantics<arbitrary>], iteration_bounds = array<i64: 1, 1>, scalar_prefetch = 0 : i64, scratch_operands = 0 : i64, tpu.core_type = #tpu.core_type<tc>, window_params = [{transform_indices = @transform_0, window_bounds = array<i64: 16, 128>}, {transform_indices = @transform_1, window_bounds = array<i64: 16, 128>}, {transform_indices = @transform_2, window_bounds = array<i64: 1, 8, 128>}]} {
    %c0_i32 = arith.constant 0 : i32
    %0 = arith.cmpi eq, %arg1, %c0_i32 : i32
    %1 = arith.extui %0 : i1 to i32
    %c0_i32_0 = arith.constant 0 : i32
    %2 = arith.cmpi ne, %1, %c0_i32_0 : i32
    scf.if %2 {
      %cst_10 = arith.constant 0.000000e+00 : f32
      %15 = vector.broadcast %cst_10 : f32 to vector<8x128xf32>
      %c0_11 = arith.constant 0 : index
      %c0_12 = arith.constant 0 : index
      %c0_13 = arith.constant 0 : index
      %16 = vector.load %arg4[%c0_11, %c0_12, %c0_13] : memref<1x8x128xf32, #tpu.memory_space<vmem>>, vector<1x8x128xf32>
      %17 = vector.shape_cast %16 : vector<1x8x128xf32> to vector<8x128xf32>
      %18 = vector.shape_cast %15 : vector<8x128xf32> to vector<1x8x128xf32>
      tpu.vector_store %arg4[%c0_11, %c0_12, %c0_13], %18 {strides = array<i32>} : memref<1x8x128xf32, #tpu.memory_space<vmem>>, vector<1x8x128xf32>,
    } else {
    }
    %c0 = arith.constant 0 : index
    %c0_1 = arith.constant 0 : index
    %3 = vector.load %arg2[%c0, %c0_1] : memref<16x128xf32, #tpu.memory_space<vmem>>, vector<16x128xf32>
    %c0_2 = arith.constant 0 : index
    %c0_3 = arith.constant 0 : index
    %4 = vector.load %arg3[%c0_2, %c0_3] : memref<16x128xf32, #tpu.memory_space<vmem>>, vector<16x128xf32>
    %5 = arith.subf %3, %4 : vector<16x128xf32>
    %6 = arith.mulf %5, %5 : vector<16x128xf32>
    %c0_4 = arith.constant 0 : index
    %c0_5 = arith.constant 0 : index
    %c0_6 = arith.constant 0 : index
    %7 = vector.load %arg4[%c0_4, %c0_5, %c0_6] : memref<1x8x128xf32, #tpu.memory_space<vmem>>, vector<1x8x128xf32>
    %8 = vector.shape_cast %7 : vector<1x8x128xf32> to vector<8x128xf32>
    %9 = vector.shape_cast %6 : vector<16x128xf32> to vector<2x8x128xf32>
    %cst = arith.constant dense<0.000000e+00> : vector<8x128xf32>
    %10 = vector.multi_reduction <add>, %9, %cst [0] : vector<2x8x128xf32> to vector<8x128xf32>
    %11 = arith.addf %8, %10 : vector<8x128xf32>
    %c0_7 = arith.constant 0 : index
    %c0_8 = arith.constant 0 : index
    %c0_9 = arith.constant 0 : index
    %12 = vector.load %arg4[%c0_7, %c0_8, %c0_9] : memref<1x8x128xf32, #tpu.memory_space<vmem>>, vector<1x8x128xf32>
    %13 = vector.shape_cast %12 : vector<1x8x128xf32> to vector<8x128xf32>
    %14 = vector.shape_cast %11 : vector<8x128xf32> to vector<1x8x128xf32>
    tpu.vector_store %arg4[%c0_7, %c0_8, %c0_9], %14 {strides = array<i32>} : memref<1x8x128xf32, #tpu.memory_space<vmem>>, vector<1x8x128xf32>,
    return
  }
  func.func @transform_0(%arg0: i32, %arg1: i32) -> (i32, i32) {
    %c1_i32 = arith.constant 1 : i32
    %0 = arith.muli %arg0, %c1_i32 : i32
    %1 = arith.addi %0, %arg1 : i32
    %c0_i32 = arith.constant 0 : i32
    %2 = arith.minsi %1, %c0_i32 : i32
    %c0_i32_0 = arith.constant 0 : i32
    %c0_i32_1 = arith.constant 0 : i32
    return %2, %c0_i32_0 : i32, i32
  }
  func.func @transform_1(%arg0: i32, %arg1: i32) -> (i32, i32) {
    %c1_i32 = arith.constant 1 : i32
    %0 = arith.muli %arg0, %c1_i32 : i32
    %1 = arith.addi %0, %arg1 : i32
    %c0_i32 = arith.constant 0 : i32
    %2 = arith.minsi %1, %c0_i32 : i32
    %c0_i32_0 = arith.constant 0 : i32
    %c0_i32_1 = arith.constant 0 : i32
    return %2, %c0_i32_0 : i32, i32
  }
  func.func @transform_2(%arg0: i32, %arg1: i32) -> (i32, i32, i32) {
    %c0_i32 = arith.constant 0 : i32
    %c0_i32_0 = arith.constant 0 : i32
    %c0_i32_1 = arith.constant 0 : i32
    return %arg0, %c0_i32, %c0_i32_0 : i32, i32, i32
  }
}

</mosaic_0001>

<bundles_post_ra>
// kernel: tpu_custom_call.1
= control target key start
LH: loop header
LB: loop body
LE: loop exit
PB: predicated region body
PF: predicated region fallthrough
CT: control target
= control target key end

     0   :  { %7 = vsyncpa [#allocation3], 0  ;;  %s198_s0 = inlined_call_operand.hbm [shape: f32[16,128], index: 0, kind: input, shape index: {}]   ;;  %s199_s1 = inlined_call_operand.hbm [shape: f32[16,128], index: 1, kind: input, shape index: {}]   ;;  %s200_s2 = inlined_call_operand.hbm [shape: f32[1,8,128], index: 2, kind: output, shape index: {}]  }
   0x1   :  { %8 = vsyncpa [#allocation6], 0 }
   0x2   :  { %9 = vsyncpa [#allocation4], 0  ;;  %s169_s9 = smov [#allocation2]  }
   0x3   :  { %s21_s10 = sshll.u32 %s169_s9, 4  ;;  %s22_s10 = int_to_ptr.vmem [resolvable:$true] %s21_s10 }
   0x4   :  { %s111_s11 = scalar_lea.vmem %s22_s10, 256  ;;  %p116_p1 = scmp.lt.s32.totalorder %s22_s10, %s22_s10 }
   0x5   :  { %p112_p0 = scmp.ne.s32.totalorder %s22_s10, %s111_s11  ;;  %p117_p2 = scmp.lt.s32.totalorder %s111_s11, %s111_s11 }
   0x7   :  { %p118_p3 = por %p117_p2, %p116_p1 }
   0x9   :  { %p119_p4 = pnand %p118_p3, %p112_p0 }
   0xb   :  { %122 = shalt.err (!%p119_p4)
}
   0xc   :  { %s170_s12 = smov 128   ;;  %s171_s13 = smov 8  }
   0xd   :  { %27 = dma.hbm_to_vmem [thread:$0]  %s198_s0, 256, %s22_s10, [#allocation3], %s170_s12, %s170_s12, %s171_s13  }
   0xe   :  { %s172_s16 = smov [#allocation5]  }
   0xf   :  { %s39_s17 = sshll.u32 %s172_s16, 4  ;;  %s40_s17 = int_to_ptr.vmem [resolvable:$true] %s39_s17 }
  0x10   :  { %s131_s18 = scalar_lea.vmem %s40_s17, 256  ;;  %p136_p6 = scmp.lt.s32.totalorder %s40_s17, %s40_s17 }
  0x11   :  { %p132_p5 = scmp.ne.s32.totalorder %s40_s17, %s131_s18  ;;  %p137_p7 = scmp.lt.s32.totalorder %s131_s18, %s131_s18 }
  0x13   :  { %p138_p8 = por %p137_p7, %p136_p6 }
  0x15   :  { %p139_p9 = pnand %p138_p8, %p132_p5 }
  0x17   :  { %142 = shalt.err (!%p139_p9)
}
  0x18   :  { %45 = dma.hbm_to_vmem [thread:$0]  %s199_s1, 256, %s40_s17, [#allocation6], %s170_s12, %s170_s12, %s171_s13  }
  0x19   :  { %163 = dma.done.wait [#allocation3], 256  }
  0x1a   :  { %164 = vsyncadd [#allocation3], 4294967040 }
  0x1b   :  { %165 = dma.done.wait [#allocation6], 256  }
  0x1c   :  { %166 = vsyncadd [#allocation6], 4294967040  ;;  %v65_v0 = vld [vmem:[#allocation2] sm:$0xff]  ;;  %v66_v1 = vld [vmem:[#allocation2 + $0x8] sm:$0xff]  ;;  %s173_s0 = smov [#allocation7]  }
  0x1d   :  { %v67_v2 = vld [vmem:[#allocation5] sm:$0xff]  ;;  %v68_v3 = vld [vmem:[#allocation5 + $0x8] sm:$0xff]  ;;  %s83_s21 = sshll.u32 %s173_s0, 4  ;;  %s84_s21 = int_to_ptr.vmem [resolvable:$true] %s83_s21 }
  0x1e   :  { %v69_v4 = vsub.f32 %v65_v0, %v67_v2  ;;  %v70_v5 = vsub.f32 %v66_v1, %v68_v3  ;;  %s143_s22 = scalar_lea.vmem %s84_s21, 128  ;;  %p148_p11 = scmp.lt.s32.totalorder %s84_s21, %s84_s21 }
  0x1f   :  { %p144_p10 = scmp.ne.s32.totalorder %s84_s21, %s143_s22  ;;  %p149_p12 = scmp.lt.s32.totalorder %s143_s22, %s143_s22 }
  0x20   :  { %v71_v6 = vmul.f32 %v69_v4, %v69_v4  ;;  %v72_v7 = vmul.f32 %v70_v5, %v70_v5 }
  0x21   :  { %p150_p13 = por %p149_p12, %p148_p11 }
  0x22   :  { %v74_v8 = vadd.f32 %v72_v7, %v71_v6 }
  0x23   :  { %p151_p0 = pnand %p150_p13, %p144_p10 }
  0x24   :  { %76 = vst [vmem:[#allocation7] sm:$0xff] %v74_v8 }
  0x25   :  { %154 = shalt.err (!%p151_p0)
}
  0x26   :  { %86 = dma.vmem_to_hbm [thread:$0]  %s84_s21, 128, %s200_s2, [#allocation4]  }
  0x27   :  { %167 = dma.done.wait [#allocation4], 128  }
  0x28   :  { %168 = vsyncadd [#allocation4], 4294967168 }
  0x29   :  { %90 = vsyncpa [#allocation3], 1 }
  0x2a   :  { %91 = vsyncpa [#allocation6], 1 }
  0x2b   :  { %92 = vsyncpa [#allocation4], 1 }

</bundles_post_ra>
